<compile_context>
chip_gen: v7x
topology: tpu7x:2x2x1
jax: 0.10.0
libtpu: 0.0.40
codegen_flags: <defaults>
</compile_context>

<pallas_src>
import jax
import jax.numpy as jnp
from jax.experimental import pallas as pl
from jax.experimental.pallas import tpu as pltpu

INPUT_SIZE = 1
HIDDEN_SIZE = 10
NUM_CLASSES = 2

_SUBLANES = 8      # f32 sublanes per vreg
_LANES = 128       # lanes per vreg
_MAX_LANE_TILE = 16384   # keeps per-step VMEM ~<10 MiB (safe on every gen)


def _cdiv(a, b):
    return (a + b - 1) // b


def _round_up(a, m):
    return _cdiv(a, m) * m


def mlp_kernel(x_ref, w1_ref, b1_ref, w2_ref, b2_ref, o_ref):
    # x_ref : [8, TL]                      batch packed sublane(8) x lane(TL)
    # w1_ref: [HIDDEN, 1]   b1_ref: [HIDDEN, 1]
    # w2_ref: [HIDDEN, NUM_CLASSES]        b2_ref: [NUM_CLASSES, 1]
    # o_ref : [NUM_CLASSES, 8, TL]
    x = x_ref[...]                               # [8, TL]
    w1 = w1_ref[...][:, :, None]                 # [H, 1, 1]
    b1 = b1_ref[...][:, :, None]                 # [H, 1, 1]

    # fc1 + ReLU entirely on the VPU: broadcast [H,1,1] * [1,8,TL] -> [H,8,TL]
    h = jnp.maximum(w1 * x[None, :, :] + b1, 0.0)

    w2 = w2_ref[...]                             # [H, NUM_CLASSES]
    b2 = b2_ref[...]                             # [NUM_CLASSES, 1]

    # fc2: per-class broadcast multiply + leading-axis sum (plain vector adds),
    # each class row stored directly (no concatenate intermediate).
    for c in range(NUM_CLASSES):                 # static, tiny unroll
        wc = w2[:, c:c + 1][:, :, None]          # [H, 1, 1]
        out_c = jnp.sum(wc * h, axis=0) + b2[c:c + 1, :]   # [8, TL]
        o_ref[c] = out_c.astype(o_ref.dtype)


def _choose_tiling(B, lane_tile):
    lane_tile = max(_LANES, _round_up(lane_tile, _LANES))
    lane_tile = min(lane_tile, _MAX_LANE_TILE)
    l_needed = _cdiv(B, _SUBLANES)               # lane columns of real data
    n_tiles = max(1, _cdiv(l_needed, lane_tile))
    if n_tiles == 1 and l_needed > _LANES:
        n_tiles = 2                              # give v7x's 2nd TC work
    tl = _round_up(_cdiv(l_needed, n_tiles), _LANES)
    return n_tiles, tl


def mlp_forward(x, w1, b1, w2, b2, *, lane_tile=8192):
    """x: [B, INPUT_SIZE]; weights in PyTorch nn.Linear layout:
       w1: [HIDDEN, INPUT_SIZE], b1: [HIDDEN], w2: [NUM_CLASSES, HIDDEN],
       b2: [NUM_CLASSES].  Returns [B, NUM_CLASSES] float32."""
    B = x.shape[0]
    n_tiles, tl = _choose_tiling(B, lane_tile)
    l_pad = n_tiles * tl
    bp = _SUBLANES * l_pad

    # Sublane+lane dense packing: sample s -> (s // l_pad, s % l_pad).
    xf = x.astype(jnp.float32).reshape(-1)       # free: [B,1] -> [B]
    xf = jnp.pad(xf, (0, bp - B))                # only real wrapper copy
    x_packed = xf.reshape(_SUBLANES, l_pad)      # free, contiguous reshape

    w1k = w1.astype(jnp.float32).reshape(HIDDEN_SIZE, INPUT_SIZE)   # [10, 1]
    b1k = b1.astype(jnp.float32).reshape(HIDDEN_SIZE, 1)            # [10, 1]
    w2k = w2.astype(jnp.float32).T                                  # [10, 2]
    b2k = b2.astype(jnp.float32).reshape(NUM_CLASSES, 1)            # [2, 1]

    # Per-step VMEM estimate (bytes): double-buffered x/out blocks + h scratch.
    step_bytes = 4 * tl * (2 * (_SUBLANES + NUM_CLASSES * _SUBLANES)
                           + HIDDEN_SIZE * _SUBLANES + _SUBLANES)
    vmem_limit = int(min(48 * 2**20, max(16 * 2**20, 4 * step_bytes)))

    out_packed = pl.pallas_call(
        mlp_kernel,
        out_shape=jax.ShapeDtypeStruct((NUM_CLASSES, _SUBLANES, l_pad),
                                       jnp.float32),
        grid=(n_tiles,),
        in_specs=[
            pl.BlockSpec((_SUBLANES, tl), lambda i: (0, i)),        # x tile
            pl.BlockSpec((HIDDEN_SIZE, INPUT_SIZE), lambda i: (0, 0)),
            pl.BlockSpec((HIDDEN_SIZE, 1), lambda i: (0, 0)),
            pl.BlockSpec((HIDDEN_SIZE, NUM_CLASSES), lambda i: (0, 0)),
            pl.BlockSpec((NUM_CLASSES, 1), lambda i: (0, 0)),
        ],
        out_specs=pl.BlockSpec((NUM_CLASSES, _SUBLANES, tl),
                               lambda i: (0, 0, i)),
        compiler_params=pltpu.CompilerParams(
            dimension_semantics=("parallel",),        # shard tiles on v7x TCs
            vmem_limit_bytes=vmem_limit),
    )(x_packed, w1k, b1k, w2k, b2k)

    # Free reshape back to [NUM_CLASSES, bp]; slice off padded samples.
    # TODO(synk): in production return the [NUM_CLASSES, B] layout and fuse the
    # transpose into the consumer instead of paying this extra pass.
    return out_packed.reshape(NUM_CLASSES, bp)[:, :B].T


def init_params(key):
    # Mimics nn.Linear's U(-1/sqrt(fan_in), 1/sqrt(fan_in)) init, PyTorch layout.
    k1, k2, k3, k4 = jax.random.split(key, 4)
    bound1 = 1.0 / (INPUT_SIZE ** 0.5)
    bound2 = 1.0 / (HIDDEN_SIZE ** 0.5)
    w1 = jax.random.uniform(k1, (HIDDEN_SIZE, INPUT_SIZE), jnp.float32, -bound1, bound1)
    b1 = jax.random.uniform(k2, (HIDDEN_SIZE,), jnp.float32, -bound1, bound1)
    w2 = jax.random.uniform(k3, (NUM_CLASSES, HIDDEN_SIZE), jnp.float32, -bound2, bound2)
    b2 = jax.random.uniform(k4, (NUM_CLASSES,), jnp.float32, -bound2, bound2)
    return w1, b1, w2, b2


def _reference(x, w1, b1, w2, b2):
    # Plain-JAX reference matching PyTorch nn.Linear semantics.
    h = jnp.maximum(x @ w1.T + b1, 0.0)
    return h @ w2.T + b2


if __name__ == "__main__":
    key = jax.random.PRNGKey(0)
    kx, kx2, kp = jax.random.split(key, 3)
    w1, b1, w2, b2 = init_params(kp)

    # Small batch (single-tile path).
    batch = 8
    x = jax.random.normal(kx, (batch, INPUT_SIZE), jnp.float32)
    out = jax.block_until_ready(mlp_forward(x, w1, b1, w2, b2))
    ref = _reference(x, w1, b1, w2, b2)
    assert out.shape == (batch, NUM_CLASSES)
    assert jnp.allclose(out, ref, atol=1e-5, rtol=1e-5)

    # Larger, non-aligned batch with small lane tiles to exercise the grid,
    # sublane packing, and padding/slicing path (grid of 3 tiles here).
    batch2 = 2500
    x2 = jax.random.normal(kx2, (batch2, INPUT_SIZE), jnp.float32)
    out2 = jax.block_until_ready(mlp_forward(x2, w1, b1, w2, b2, lane_tile=128))
    ref2 = _reference(x2, w1, b1, w2, b2)
    assert out2.shape == (batch2, NUM_CLASSES)
    assert jnp.allclose(out2, ref2, atol=1e-5, rtol=1e-5)

    print("KERNEL_OK")
</pallas_src>

<mosaic_0001>
module attributes {stable_mosaic.version = 11 : i64} {
  func.func @mlp_kernel(%arg0: i32, %arg1: memref<8x128xf32, #tpu.memory_space<vmem>>, %arg2: memref<10x1xf32, #tpu.memory_space<vmem>>, %arg3: memref<10x1xf32, #tpu.memory_space<vmem>>, %arg4: memref<10x2xf32, #tpu.memory_space<vmem>>, %arg5: memref<2x1xf32, #tpu.memory_space<vmem>>, %arg6: memref<2x8x128xf32, #tpu.memory_space<vmem>>) attributes {dimension_semantics = [#tpu.dimension_semantics<parallel>], iteration_bounds = array<i64: 1>, scalar_prefetch = 0 : i64, scratch_operands = 0 : i64, tpu.core_type = #tpu.core_type<tc>, window_params = [{transform_indices = @transform_0, window_bounds = array<i64: 8, 128>}, {pipeline_mode = #tpu.pipeline_mode<synchronous>, transform_indices = @transform_1, window_bounds = array<i64: 10, 1>}, {pipeline_mode = #tpu.pipeline_mode<synchronous>, transform_indices = @transform_2, window_bounds = array<i64: 10, 1>}, {pipeline_mode = #tpu.pipeline_mode<synchronous>, transform_indices = @transform_3, window_bounds = array<i64: 10, 2>}, {pipeline_mode = #tpu.pipeline_mode<synchronous>, transform_indices = @transform_4, window_bounds = array<i64: 2, 1>}, {transform_indices = @transform_5, window_bounds = array<i64: 2, 8, 128>}]} {
    %c0 = arith.constant 0 : index
    %c0_0 = arith.constant 0 : index
    %0 = vector.load %arg1[%c0, %c0_0] : memref<8x128xf32, #tpu.memory_space<vmem>>, vector<8x128xf32>
    %c0_1 = arith.constant 0 : index
    %c0_2 = arith.constant 0 : index
    %1 = vector.load %arg2[%c0_1, %c0_2] : memref<10x1xf32, #tpu.memory_space<vmem>>, vector<10x1xf32>
    %2 = vector.shape_cast %1 : vector<10x1xf32> to vector<10x1x1xf32>
    %c0_3 = arith.constant 0 : index
    %c0_4 = arith.constant 0 : index
    %3 = vector.load %arg3[%c0_3, %c0_4] : memref<10x1xf32, #tpu.memory_space<vmem>>, vector<10x1xf32>
    %4 = vector.shape_cast %3 : vector<10x1xf32> to vector<10x1x1xf32>
    %5 = vector.shape_cast %0 : vector<8x128xf32> to vector<1x8x128xf32>
    %6 = vector.broadcast %2 : vector<10x1x1xf32> to vector<10x8x128xf32>
    %7 = vector.broadcast %5 : vector<1x8x128xf32> to vector<10x8x128xf32>
    %8 = arith.mulf %6, %7 : vector<10x8x128xf32>
    %9 = vector.broadcast %4 : vector<10x1x1xf32> to vector<10x8x128xf32>
    %10 = arith.addf %8, %9 : vector<10x8x128xf32>
    %cst = arith.constant 0.000000e+00 : f32
    %11 = vector.broadcast %cst : f32 to vector<10x8x128xf32>
    %12 = arith.maximumf %10, %11 : vector<10x8x128xf32>
    %c0_5 = arith.constant 0 : index
    %c0_6 = arith.constant 0 : index
    %13 = vector.load %arg4[%c0_5, %c0_6] : memref<10x2xf32, #tpu.memory_space<vmem>>, vector<10x2xf32>
    %c0_7 = arith.constant 0 : index
    %c0_8 = arith.constant 0 : index
    %14 = vector.load %arg5[%c0_7, %c0_8] : memref<2x1xf32, #tpu.memory_space<vmem>>, vector<2x1xf32>
    %15 = vector.extract_strided_slice %13 {offsets = [0, 0], sizes = [10, 1], strides = [1, 1]} : vector<10x2xf32> to vector<10x1xf32>
    %16 = vector.shape_cast %15 : vector<10x1xf32> to vector<10x1x1xf32>
    %17 = vector.broadcast %16 : vector<10x1x1xf32> to vector<10x8x128xf32>
    %18 = arith.mulf %17, %12 : vector<10x8x128xf32>
    %cst_9 = arith.constant dense<0.000000e+00> : vector<8x128xf32>
    %19 = vector.multi_reduction <add>, %18, %cst_9 [0] : vector<10x8x128xf32> to vector<8x128xf32>
    %20 = vector.extract_strided_slice %14 {offsets = [0, 0], sizes = [1, 1], strides = [1, 1]} : vector<2x1xf32> to vector<1x1xf32>
    %21 = vector.broadcast %20 : vector<1x1xf32> to vector<8x128xf32>
    %22 = arith.addf %19, %21 : vector<8x128xf32>
    %c0_10 = arith.constant 0 : index
    %c0_11 = arith.constant 0 : index
    %c0_12 = arith.constant 0 : index
    %23 = vector.load %arg6[%c0_10, %c0_11, %c0_12] : memref<2x8x128xf32, #tpu.memory_space<vmem>>, vector<1x8x128xf32>
    %24 = vector.shape_cast %23 : vector<1x8x128xf32> to vector<8x128xf32>
    %25 = vector.shape_cast %22 : vector<8x128xf32> to vector<1x8x128xf32>
    tpu.vector_store %arg6[%c0_10, %c0_11, %c0_12], %25 {strides = array<i32>} : memref<2x8x128xf32, #tpu.memory_space<vmem>>, vector<1x8x128xf32>,
    %26 = vector.extract_strided_slice %13 {offsets = [0, 1], sizes = [10, 1], strides = [1, 1]} : vector<10x2xf32> to vector<10x1xf32>
    %27 = vector.shape_cast %26 : vector<10x1xf32> to vector<10x1x1xf32>
    %28 = vector.broadcast %27 : vector<10x1x1xf32> to vector<10x8x128xf32>
    %29 = arith.mulf %28, %12 : vector<10x8x128xf32>
    %cst_13 = arith.constant dense<0.000000e+00> : vector<8x128xf32>
    %30 = vector.multi_reduction <add>, %29, %cst_13 [0] : vector<10x8x128xf32> to vector<8x128xf32>
    %31 = vector.extract_strided_slice %14 {offsets = [1, 0], sizes = [1, 1], strides = [1, 1]} : vector<2x1xf32> to vector<1x1xf32>
    %32 = vector.broadcast %31 : vector<1x1xf32> to vector<8x128xf32>
    %33 = arith.addf %30, %32 : vector<8x128xf32>
    %c1 = arith.constant 1 : index
    %c0_14 = arith.constant 0 : index
    %c0_15 = arith.constant 0 : index
    %34 = vector.load %arg6[%c1, %c0_14, %c0_15] : memref<2x8x128xf32, #tpu.memory_space<vmem>>, vector<1x8x128xf32>
    %35 = vector.shape_cast %34 : vector<1x8x128xf32> to vector<8x128xf32>
    %36 = vector.shape_cast %33 : vector<8x128xf32> to vector<1x8x128xf32>
    tpu.vector_store %arg6[%c1, %c0_14, %c0_15], %36 {strides = array<i32>} : memref<2x8x128xf32, #tpu.memory_space<vmem>>, vector<1x8x128xf32>,
    return
  }
  func.func @transform_0(%arg0: i32) -> (i32, i32) {
    %c0_i32 = arith.constant 0 : i32
    %c0_i32_0 = arith.constant 0 : i32
    return %c0_i32, %arg0 : i32, i32
  }
  func.func @transform_1(%arg0: i32) -> (i32, i32) {
    %c0_i32 = arith.constant 0 : i32
    %c0_i32_0 = arith.constant 0 : i32
    %c0_i32_1 = arith.constant 0 : i32
    return %c0_i32, %c0_i32_0 : i32, i32
  }
  func.func @transform_2(%arg0: i32) -> (i32, i32) {
    %c0_i32 = arith.constant 0 : i32
    %c0_i32_0 = arith.constant 0 : i32
    %c0_i32_1 = arith.constant 0 : i32
    return %c0_i32, %c0_i32_0 : i32, i32
  }
  func.func @transform_3(%arg0: i32) -> (i32, i32) {
    %c0_i32 = arith.constant 0 : i32
    %c0_i32_0 = arith.constant 0 : i32
    %c0_i32_1 = arith.constant 0 : i32
    return %c0_i32, %c0_i32_0 : i32, i32
  }
  func.func @transform_4(%arg0: i32) -> (i32, i32) {
    %c0_i32 = arith.constant 0 : i32
    %c0_i32_0 = arith.constant 0 : i32
    %c0_i32_1 = arith.constant 0 : i32
    return %c0_i32, %c0_i32_0 : i32, i32
  }
  func.func @transform_5(%arg0: i32) -> (i32, i32, i32) {
    %c0_i32 = arith.constant 0 : i32
    %c0_i32_0 = arith.constant 0 : i32
    %c0_i32_1 = arith.constant 0 : i32
    return %c0_i32, %c0_i32_0, %arg0 : i32, i32, i32
  }
}

</mosaic_0001>

<bundles_post_ra>
// kernel: tpu_custom_call.1
= control target key start
LH: loop header
LB: loop body
LE: loop exit
PB: predicated region body
PF: predicated region fallthrough
CT: control target
= control target key end

     0   :  { %v30_v0 = vlaneseq  ;;  %v674_v1 = vmov 0   ;;  %v675_v3 = vmov 1   ;;  %v676_v4 = vmov 1966171168   ;;  %s885_s0 = inlined_call_operand.vmem [shape: f32[8,128], index: 0, kind: input, shape index: {}]   ;;  %s886_s1 = inlined_call_operand.vmem [shape: f32[10,1], index: 1, kind: input, shape index: {}]   ;;  %s887_s2 = inlined_call_operand.vmem [shape: f32[10,1], index: 2, kind: input, shape index: {}]   ;;  %s888_s3 = inlined_call_operand.vmem [shape: f32[10,2], index: 3, kind: input, shape index: {}]   ;;  %s889_s4 = inlined_call_operand.vmem [shape: f32[2,1], index: 4, kind: input, shape index: {}]   ;;  %s890_s5 = inlined_call_operand.hbm [shape: f32[2,8,128], index: 5, kind: output, shape index: {}]  }
   0x1   :  { %638 = vset.pattern.permute.xlu1 %v674_v1  ;;  %v714_v2 = vld.sshfl [vmem:[%s886_s1 + $0x8] sm:$0x11 pattern:$0x75316420]  ;;  %639 = vset.pattern.permute.xlu0 %v675_v3  ;;  %v28_v5 = vunpack.c.l.s4 %v676_v4  ;;  %v22_v7 = vld [vmem:[%s886_s1] sm:$0xff] }
   0x2   :  { %v31_v6 = vshrl.u32 %v30_v0, 7 }
   0x3   :  { %10 = vsyncpa [#allocation3], 0  ;;  %v29_v8 = vunpack.c.0.s8 %v28_v5  ;;  %v82_v9 = vcombine.high %v714_v2, %v714_v2  ;;  %v26_v10 = vcombine.high %v22_v7, %v22_v7  ;;  %v362_v11 = vld [vmem:[%s888_s3] sm:$0xff]  ;;  %s677_s6 = smov [#allocation2]  }
   0x4   :  { %v727_v13 = vsub.s32 0, %v31_v6  ;;  %v367_v18 = vcombine.high %v362_v11, %v362_v11  ;;  %v97_v31 = vld [vmem:[%s887_s2] sm:$0xff]  ;;  %v771_v42 = vld.sshfl [vmem:[%s887_s2 + $0x8] sm:$0x11 pattern:$0x75316420] }
   0x5   :  { %v725_v12 = vsub.s32 %v29_v8, %v31_v6  ;;  %v101_v43 = vcombine.high %v97_v31, %v97_v31  ;;  %v627_v44 = vld.sshfl [vmem:[%s888_s3 + $0x8] sm:$0x11 pattern:$0x75316420]  ;;  %v157_v45 = vcombine.high %v771_v42, %v771_v42  ;;  %s614_s7 = sshll.u32 %s677_s6, 4  ;;  %s615_s7 = int_to_ptr.vmem [resolvable:$true] %s614_s7 }
   0x6   :  { %v423_v49 = vcombine.high %v627_v44, %v627_v44  ;;  %s650_s8 = scalar_lea.vmem %s615_s7, 256  ;;  %p655_p1 = scmp.lt.s32.totalorder %s615_s7, %s615_s7 }
   0x7   :  { %v96_v14 = vrot.slane %v82_v9, %v725_v12  ;;  %v374_v15 = vrot.slane %v362_v11, %v725_v12  ;;  %v33_v16 = vrot.slane %v22_v7, %v725_v12  ;;  %v733_v17 = vrot.slane %v26_v10, %v725_v12  ;;  %p651_p0 = scmp.ne.s32.totalorder %s615_s7, %s650_s8  ;;  %p656_p2 = scmp.lt.s32.totalorder %s650_s8, %s650_s8 }
   0x8   :  { %v381_v35 = vrot.slane %v367_v18, %v725_v12  ;;  %v108_v38 = vrot.slane %v97_v31, %v725_v12  ;;  %v115_v52 = vrot.slane %v101_v43, %v725_v12  ;;  %v430_v53 = vrot.slane %v627_v44, %v725_v12 }
   0x9   :  { %v211_v19 = vrot.slane %v96_v14, %v727_v13  ;;  %v390_v20 = vrot.slane %v374_v15, %v725_v12  ;;  %v382_v21 = vcombine.high %v374_v15, %v374_v15  ;;  %v49_v22 = vrot.slane %v33_v16, %v725_v12  ;;  %p657_p3 = por %p656_p2, %p655_p1 }
   0xa   :  { %v42_v23 = vcombine.high %v733_v17, %v733_v17  ;;  %v41_v24 = vcombine.high %v33_v16, %v33_v16  ;;  %v766_v40 = vrot.slane %v381_v35, %v725_v12  ;;  %v383_v41 = vcombine.high %v381_v35, %v381_v35  ;;  %v364_v16 = vld [vmem:[%s889_s4] sm:$0x3] }
   0xb   :  { %249 = vperm.xlu1 %638, %v211_v19   ;;  %v741_v25 = vrot.slane %v390_v20, %v727_v13  ;;  %v412_v26 = vcombine.high %v390_v20, %v390_v20  ;;  %v71_v27 = vcombine.high %v49_v22, %v49_v22  ;;  %v744_v28 = vrot.slane %v382_v21, %v725_v12  ;;  %p658_p4 = pnand %p657_p3, %p651_p0 }
   0xc   :  { %v70_v29 = vrot.slane %v42_v23, %v725_v12  ;;  %v63_v30 = vrot.slane %v41_v24, %v725_v12  ;;  %v116_v48 = vcombine.high %v108_v38, %v108_v38  ;;  %v782_v50 = vrot.slane %v766_v40, %v727_v13  ;;  %628 = vpush %v364_v16 }
   0xd   :  { %544 = vperm.xlu0 %639, %v741_v25   ;;  %v183_v32 = vrot.slane %v71_v27, %v727_v13  ;;  %v754_v33 = vrot.slane %v412_v26, %v727_v13  ;;  %v414_v34 = vcombine.high %v744_v28, %v744_v28  ;;  %v785_v51 = vrot.slane %v383_v41, %v725_v12 }
   0xe   :  { %v195_v36 = vrot.slane %v70_v29, %v727_v13  ;;  %v73_v37 = vcombine.high %v63_v30, %v63_v30  ;;  %v74_v47 = vcombine.high %v70_v29, %v70_v29  ;;  %v138_v55 = vrot.slane %v116_v48, %v725_v12 }
   0xf   :  { %221 = vperm.xlu1 %638, %v183_v32   ;;  %v763_v39 = vrot.slane %v414_v34, %v727_v13  ;;  %v792_v56 = vrot.slane %v157_v45, %v725_v12  ;;  %v437_v57 = vrot.slane %v423_v49, %v725_v12  ;;  %v796_v58 = vrot.slane %v430_v53, %v727_v13 }
  0x10   :  { %v187_v46 = vrot.slane %v73_v37, %v727_v13  ;;  %v203_v54 = vrot.slane %v74_v47, %v727_v13  ;;  %v461_v59 = vrot.slane %v785_v51, %v727_v13  ;;  %v269_v62 = vrot.slane %v138_v55, %v727_v13 }
  0x11   :  { %552 = vperm.xlu0 %639, %v754_v33   ;;  %v301_v60 = vrot.slane %v792_v56, %v727_v13  ;;  %v804_v61 = vrot.slane %v437_v57, %v727_v13  ;;  %v148_v63 = vcombine.high %v138_v55, %v138_v55  ;;  %v117_v0 = vcombine.high %v115_v52, %v115_v52  ;;  %v21_v55 = vld [vmem:[%s885_s0] sm:$0xff] }
  0x12   :  { %v175_v4 = vrot.slane %v49_v22, %v727_v13  ;;  %v179_v7 = vrot.slane %v63_v30, %v727_v13  ;;  %v56_v8 = vrot.slane %v733_v17, %v725_v12  ;;  %v89_v17 = vrot.slane %v714_v2, %v725_v12 }
  0x13   :  { %233 = vperm.xlu1 %638, %v195_v36   ;;  %v277_v5 = vrot.slane %v148_v63, %v727_v13  ;;  %v145_v6 = vrot.slane %v117_v0, %v725_v12  ;;  %v445_v19 = vrot.slane %v744_v28, %v727_v13  ;;  %v124_v21 = vrot.slane %v108_v38, %v725_v12 }
  0x14   :  { %v191_v11 = vrot.slane %v56_v8, %v727_v13  ;;  %v72_v14 = vcombine.high %v56_v8, %v56_v8  ;;  %v207_v20 = vrot.slane %v89_v17, %v727_v13  ;;  %v602_v22 = vrot.slane %v364_v16, 1 }
  0x15   :  { %556 = vperm.xlu0 %639, %v763_v39   ;;  %v285_v9 = vrot.slane %v145_v6, %v727_v13  ;;  %v149_v10 = vcombine.high %v145_v6, %v145_v6  ;;  %v265_v23 = vrot.slane %v124_v21, %v727_v13  ;;  %v146_v24 = vcombine.high %v124_v21, %v124_v21 }
  0x16   :  { %v199_v18 = vrot.slane %v72_v14, %v727_v13  ;;  %630 = vpush %v602_v22  ;;  %v131_v26 = vrot.slane %v115_v52, %v725_v12  ;;  %v164_v30 = vrot.slane %v771_v42, %v725_v12  ;;  %v413_v31 = vcombine.high %v766_v40, %v766_v40 }
  0x17   :  { %225 = vperm.xlu1 %638, %v187_v46   ;;  %v293_v15 = vrot.slane %v149_v10, %v727_v13  ;;  %v273_v2 = vrot.slane %v146_v24, %v727_v13  ;;  %v415_v34 = vcombine.high %v785_v51, %v785_v51 }
  0x18   :  { %v281_v27 = vrot.slane %v131_v26, %v727_v13  ;;  %v147_v28 = vcombine.high %v131_v26, %v131_v26  ;;  %v297_v32 = vrot.slane %v164_v30, %v727_v13 }
  0x19   :  { %560 = vperm.xlu0 %639, %v782_v50   ;;  %v469_v35 = vrot.slane %v415_v34, %v727_v13 }
  0x1a   :  { %v289_v29 = vrot.slane %v147_v28, %v727_v13 }
  0x1b   :  { %241 = vperm.xlu1 %638, %v203_v54  }
  0x1d   :  { %564 = vperm.xlu0 %639, %v461_v59  }
  0x1f   :  { %307 = vperm.xlu1 %638, %v269_v62  }
  0x21   :  { %642 = vset.pattern.permute.xlu0 %v674_v1 }
  0x22   :  { %213 = vperm.xlu0 %642, %v175_v4  }
  0x23   :  { %315 = vperm.xlu1 %638, %v277_v5  }
  0x26   :  { %217 = vperm.xlu0 %642, %v179_v7  }
  0x27   :  { %323 = vperm.xlu1 %638, %v285_v9  }
  0x2a   :  { %229 = vperm.xlu0 %642, %v191_v11  }
  0x2b   :  { %331 = vperm.xlu1 %638, %v293_v15  }
  0x2e   :  { %237 = vperm.xlu0 %642, %v199_v18  }
  0x2f   :  { %483 = vperm.xlu1 %638, %v445_v19  }
  0x32   :  { %245 = vperm.xlu0 %642, %v207_v20  }
  0x33   :  { %640 = vset.pattern.permute.xlu1 %v675_v3 }
  0x34   :  { %548 = vperm.xlu1 %640, %v445_v19  }
  0x36   :  { %303 = vperm.xlu0 %642, %v265_v23  }
  0x38   :  { %641 = vset.pattern.permute.xlu1 %v674_v1 }
  0x39   :  { %487 = vperm.xlu1 %641, %v754_v33   ;;  %v465_v33 = vrot.slane %v413_v31, %v727_v13 }
  0x3a   :  { %311 = vperm.xlu0 %642, %v273_v2  }
  0x3d   :  { %491 = vperm.xlu1 %641, %v763_v39   ;;  %s629_s0 = spop %628 }
  0x3e   :  { %319 = vperm.xlu0 %642, %v281_v27  }
  0x41   :  { %495 = vperm.xlu1 %641, %v782_v50  }
  0x42   :  { %327 = vperm.xlu0 %642, %v289_v29  }
  0x45   :  { %499 = vperm.xlu1 %641, %v461_v59  }
  0x46   :  { %479 = vperm.xlu0 %642, %v741_v25  }
  0x47   :  { %s631_s30 = spop %630 }
  0x49   :  { %335 = vperm.xlu1 %641, %v297_v32  }
  0x4a   :  { %503 = vperm.xlu0 %642, %v465_v33  }
  0x4d   :  { %643 = vset.pattern.permute.xlu1 %v675_v3 }
  0x4e   :  { %507 = vperm.xlu0 %642, %v469_v35   ;;  %568 = vperm.xlu1 %643, %v465_v33  }
  0x52   :  { %511 = vperm.xlu0 %642, %v796_v58   ;;  %644 = vset.pattern.permute.xlu1 %v674_v1 }
  0x53   :  { %339 = vperm.xlu1 %644, %v301_v60  }
  0x56   :  { %515 = vperm.xlu0 %642, %v804_v61  }
  0x57   :  { %645 = vset.pattern.permute.xlu1 %v675_v3 }
  0x58   :  { %572 = vperm.xlu1 %645, %v469_v35  }
  0x5a   :  { %646 = vset.pattern.permute.xlu0 %v675_v3 }
  0x5c   :  { %576 = vperm.xlu1 %645, %v796_v58  }
  0x60   :  { %580 = vperm.xlu1 %645, %v804_v61  }
  0x8a   :  { %v858_v12 = vpop.permute.xlu1 %249 }
  0x8c   :  { %v545_v25 = vpop.permute.xlu0 %544 }
  0x8e   :  { %v222_v36 = vpop.permute.xlu1 %221 }
  0x8f   :  { %v254_v60 = vmul.f32 %v222_v36, %v21_v55 }
  0x90   :  { %v553_v1 = vpop.permute.xlu0 %552 }
  0x92   :  { %v234_v37 = vpop.permute.xlu1 %233 }
  0x93   :  { %v257_v15 = vmul.f32 %v234_v37, %v21_v55 }
  0x94   :  { %v860_v38 = vpop.permute.xlu0 %556 }
  0x96   :  { %v226_v13 = vpop.permute.xlu1 %225 }
  0x97   :  { %v255_v4 = vmul.f32 %v226_v13, %v21_v55 }
  0x98   :  { %v862_v39 = vpop.permute.xlu0 %560 }
  0x9a   :  { %v242_v40 = vpop.permute.xlu1 %241 }
  0x9b   :  { %v259_v30 = vmul.f32 %v242_v40, %v21_v55 }
  0x9c   :  { %v864_v41 = vpop.permute.xlu0 %564 }
  0x9e   :  { %v308_v42 = vpop.permute.xlu1 %307 }
  0xa1   :  { %v214_v3 = vpop.permute.xlu0 %213 }
  0xa2   :  { %v316_v43 = vpop.permute.xlu1 %315  ;;  %v252_v58 = vmul.f32 %v214_v3, %v21_v55 }
  0xa3   :  { %v345_v7 = vadd.f32 %v316_v43, %v255_v4 }
  0xa5   :  { %v218_v44 = vpop.permute.xlu0 %217  ;;  %v355_v19 = vmax.f32 %v345_v7, 0.0 }
  0xa6   :  { %v324_v45 = vpop.permute.xlu1 %323  ;;  %v253_v56 = vmul.f32 %v218_v44, %v21_v55 }
  0xa7   :  { %v347_v20 = vadd.f32 %v324_v45, %v257_v15 }
  0xa8   :  { %v343_v62 = vadd.f32 %v308_v42, %v253_v56 }
  0xa9   :  { %v230_v46 = vpop.permute.xlu0 %229  ;;  %v357_v34 = vmax.f32 %v347_v20, 0.0 }
  0xaa   :  { %v332_v47 = vpop.permute.xlu1 %331  ;;  %v256_v6 = vmul.f32 %v230_v46, %v21_v55  ;;  %v353_v9 = vmax.f32 %v343_v62, 0.0 }
  0xab   :  { %v349_v36 = vadd.f32 %v332_v47, %v259_v30 }
  0xad   :  { %v238_v48 = vpop.permute.xlu0 %237 }
  0xae   :  { %v484_v49 = vpop.permute.xlu1 %483  ;;  %v258_v22 = vmul.f32 %v238_v48, %v21_v55 }
  0xaf   :  { %v519_v18 = vmul.f32 %v484_v49, %v353_v9  ;;  %v359_v49 = vmax.f32 %v349_v36, 0.0 }
  0xb1   :  { %v246_v50 = vpop.permute.xlu0 %245 }
  0xb2   :  { %v260_v37 = vmul.f32 %v246_v50, %v21_v55 }
  0xb3   :  { %v549_v51 = vpop.permute.xlu1 %548 }
  0xb4   :  { %v584_v27 = vmul.f32 %v549_v51, %v353_v9 }
  0xb5   :  { %v304_v52 = vpop.permute.xlu0 %303 }
  0xb6   :  { %v342_v61 = vadd.f32 %v304_v52, %v252_v58  ;;  %v261_v52 = vmul.f32 %v858_v12, %v21_v55  ;;  %v588_v12 = vmul.f32 %v864_v41, %v357_v34 }
  0xb8   :  { %v488_v53 = vpop.permute.xlu1 %487  ;;  %v352_v8 = vmax.f32 %v342_v61, 0.0 }
  0xb9   :  { %v312_v54 = vpop.permute.xlu0 %311 }
  0xba   :  { %v344_v63 = vadd.f32 %v312_v54, %v254_v60  ;;  %v583_v21 = vmul.f32 %v545_v25, %v352_v8 }
  0xbc   :  { %v492_v57 = vpop.permute.xlu1 %491  ;;  %v354_v10 = vmax.f32 %v344_v63, 0.0  ;;  %v593_v35 = vadd.f32 %v584_v27, %v583_v21 }
  0xbd   :  { %v320_v59 = vpop.permute.xlu0 %319  ;;  %v521_v31 = vmul.f32 %v492_v57, %v355_v19 }
  0xbe   :  { %v346_v11 = vadd.f32 %v320_v59, %v256_v6  ;;  %v520_v23 = vmul.f32 %v488_v53, %v354_v10  ;;  %v585_v28 = vmul.f32 %v553_v1, %v354_v10  ;;  %v586_v1 = vmul.f32 %v860_v38, %v355_v19 }
  0xbf   :  { %v604_v19 = vstv %s631_s30 }
  0xc0   :  { %v496_v0 = vpop.permute.xlu1 %495  ;;  %v356_v24 = vmax.f32 %v346_v11, 0.0  ;;  %v594_v3 = vadd.f32 %v593_v35, %v585_v28 }
  0xc1   :  { %v328_v5 = vpop.permute.xlu0 %327 }
  0xc2   :  { %v348_v32 = vadd.f32 %v328_v5, %v258_v22  ;;  %v522_v13 = vmul.f32 %v496_v0, %v356_v24  ;;  %v587_v53 = vmul.f32 %v862_v39, %v356_v24  ;;  %v595_v50 = vadd.f32 %v594_v3, %v586_v1 }
  0xc3   :  { %v539_v39 = vstv %s629_s0 }
  0xc4   :  { %v500_v14 = vpop.permute.xlu1 %499  ;;  %v358_v44 = vmax.f32 %v348_v32, 0.0  ;;  %v596_v38 = vadd.f32 %v595_v50, %v587_v53 }
  0xc5   :  { %v480_v16 = vpop.permute.xlu0 %479  ;;  %v523_v45 = vmul.f32 %v500_v14, %v357_v34 }
  0xc6   :  { %v518_v17 = vmul.f32 %v480_v16, %v352_v8  ;;  %v597_v7 = vadd.f32 %v596_v38, %v588_v12 }
  0xc8   :  { %v528_v2 = vadd.f32 %v519_v18, %v518_v17  ;;  %v336_v26 = vpop.permute.xlu1 %335 }
  0xc9   :  { %v504_v29 = vpop.permute.xlu0 %503  ;;  %v350_v46 = vadd.f32 %v336_v26, %v260_v37 }
  0xca   :  { %v529_v33 = vadd.f32 %v528_v2, %v520_v23  ;;  %v524_v40 = vmul.f32 %v504_v29, %v358_v44 }
  0xcb   :  { %v360_v54 = vmax.f32 %v350_v46, 0.0 }
  0xcc   :  { %v530_v42 = vadd.f32 %v529_v33, %v521_v31 }
  0xcd   :  { %v508_v25 = vpop.permute.xlu0 %507  ;;  %v569_v43 = vpop.permute.xlu1 %568 }
  0xce   :  { %v531_v48 = vadd.f32 %v530_v42, %v522_v13  ;;  %v525_v57 = vmul.f32 %v508_v25, %v359_v49  ;;  %v589_v55 = vmul.f32 %v569_v43, %v358_v44 }
  0xd0   :  { %v532_v51 = vadd.f32 %v531_v48, %v523_v45  ;;  %v598_v11 = vadd.f32 %v597_v7, %v589_v55 }
  0xd1   :  { %v512_v47 = vpop.permute.xlu0 %511 }
  0xd2   :  { %v533_v56 = vadd.f32 %v532_v51, %v524_v40  ;;  %v340_v58 = vpop.permute.xlu1 %339  ;;  %v526_v61 = vmul.f32 %v512_v47, %v360_v54 }
  0xd3   :  { %v351_v59 = vadd.f32 %v340_v58, %v261_v52 }
  0xd4   :  { %v534_v60 = vadd.f32 %v533_v56, %v525_v57 }
  0xd5   :  { %v361_v62 = vmax.f32 %v351_v59, 0.0  ;;  %v516_v63 = vpop.permute.xlu0 %515 }
  0xd6   :  { %v535_v0 = vadd.f32 %v534_v60, %v526_v61 }
  0xd7   :  { %v527_v4 = vmul.f32 %v516_v63, %v361_v62  ;;  %v573_v5 = vpop.permute.xlu1 %572 }
  0xd8   :  { %v590_v8 = vmul.f32 %v573_v5, %v359_v49 }
  0xd9   :  { %v536_v6 = vadd.f32 %v535_v0, %v527_v4 }
  0xda   :  { %v599_v15 = vadd.f32 %v598_v11, %v590_v8 }
  0xdb   :  { %v541_v9 = vadd.f32 %v539_v39, %v536_v6  ;;  %v577_v10 = vpop.permute.xlu1 %576 }
  0xdc   :  { %v591_v14 = vmul.f32 %v577_v10, %v360_v54 }
  0xdd   :  { %542 = vst [vmem:[#allocation2] sm:$0xff] %v541_v9 }
  0xde   :  { %v600_v18 = vadd.f32 %v599_v15, %v591_v14 }
  0xdf   :  { %v581_v16 = vpop.permute.xlu1 %580 }
  0xe0   :  { %v592_v17 = vmul.f32 %v581_v16, %v361_v62 }
  0xe2   :  { %v601_v20 = vadd.f32 %v600_v18, %v592_v17 }
  0xe4   :  { %v606_v41 = vadd.f32 %v604_v19, %v601_v20 }
  0xe6   :  { %608 = vst [vmem:[#allocation2 + $0x8] sm:$0xff] %v606_v41 }
  0xe7   :  { %661 = shalt.err (!%p658_p4)
}
  0xe8   :  { %s662_s11 = scalar_lea.hbm %s890_s5, 256 }
  0xe9   :  { %p663_p5 = scmp.ne.s32.totalorder %s890_s5, %s662_s11  ;;  %p666_p6 = scmp.lt.u32.totalorder %s662_s11, %s890_s5 }
  0xeb   :  { %p668_p7 = pnand %p666_p6, %p663_p5 }
  0xed   :  { %671 = shalt.err (!%p668_p7)
}
  0xee   :  { %s678_s16 = smov 128   ;;  %s679_s17 = smov 8  }
  0xef   :  { %620 = dma.vmem_to_hbm [thread:$0]  %s615_s7, 256, %s890_s5, [#allocation3], %s678_s16, %s678_s16, %s679_s17  }
  0xf0   :  { %672 = dma.done.wait [#allocation3], 256  }
  0xf1   :  { %673 = vsyncadd [#allocation3], 4294967040 }
  0xf2   :  { %624 = vsyncpa [#allocation3], 1 }

</bundles_post_ra>
